<compile_context>
chip_gen: v7x
topology: tpu7x:2x2x1
jax: 0.10.0
libtpu: 0.0.40
codegen_flags: <defaults>
</compile_context>

<pallas_src>
import functools

import jax
import jax.numpy as jnp
from jax.experimental import pallas as pl
from jax.experimental.pallas import tpu as pltpu

SPACE_SIZE = 4
N_HIDDEN = 128
ACTION_SIZE = 2
OUT_PAD = 128  # lane-dense padded width of the final layer
GAMMA = 0.95


def _mlp(x, slab, w2, w3):
    """Fused 3-layer MLP on already-loaded operands.

    x:    (B, S) f32 activations
    slab: (8, H) f32, rows [0:S)=w1, S=b1, S+1=b2, S+2=b3 (zero-padded cols)
    w2:   (H, H) bf16
    w3:   (H, OUT_PAD) bf16 (zero-padded cols >= action_size)
    """
    S = x.shape[1]
    # Layer 1 on the VPU: K=S=4 would waste a full MXU push/pop, so compute
    # h1 = sum_k x[:, k] * w1[k, :] + b1 with broadcast FMAs (static unroll).
    acc = x[:, 0:1] * slab[0:1, :]
    for k in range(1, S):
        acc = acc + x[:, k:k + 1] * slab[k:k + 1, :]
    h1 = jnp.maximum(acc + slab[S:S + 1, :], 0.0)               # (B, H) f32

    # Layer 2 on the MXU: bf16 operands, f32 accumulation; bias/ReLU in f32.
    h2 = jnp.dot(h1.astype(jnp.bfloat16), w2,
                 preferred_element_type=jnp.float32)
    h2 = jnp.maximum(h2 + slab[S + 1:S + 2, :], 0.0)            # (B, H) f32

    # Layer 3 on the MXU: lane-dense (OUT_PAD-wide) result.
    out = jnp.dot(h2.astype(jnp.bfloat16), w3,
                  preferred_element_type=jnp.float32)
    return out + slab[S + 2:S + 3, :]                           # (B, OUT_PAD) f32


def dqn_forward_kernel(x_ref, slab_ref, wbf_ref, o_ref):
    slab = slab_ref[...]                       # (8, H) f32 -- exactly one vreg
    H = slab.shape[1]
    w2 = wbf_ref[0:H, :]                       # (H, H) bf16, tile-aligned slice
    w3 = wbf_ref[H:2 * H, :]                   # (H, OUT_PAD) bf16
    o_ref[...] = _mlp(x_ref[...], slab, w2, w3).astype(o_ref.dtype)


def dqn_replay_kernel(s_ref, ns_ref, r_ref, t_ref, slab_ref, wbf_ref,
                      q_ref, tgt_ref, *, gamma, action_size):
    """Fused replay-step forward math: Q(states) + Bellman targets.

    Matches the reference module's replay(): BOTH forwards use the same
    (online) network; there is no separate target network in the spec.
    """
    slab = slab_ref[...]
    H = slab.shape[1]
    w2 = wbf_ref[0:H, :]
    w3 = wbf_ref[H:2 * H, :]

    # Q(states): full lane-dense padded slab (wrapper slices :action_size).
    q_ref[...] = _mlp(s_ref[...], slab, w2, w3).astype(q_ref.dtype)

    # Q(next_states) -> mask padded lanes to -inf (padded cols are 0.0, which
    # would corrupt the max for negative Q-values) -> row max -> target.
    q_next = _mlp(ns_ref[...], slab, w2, w3)
    lane = jax.lax.broadcasted_iota(jnp.int32, q_next.shape, dimension=1)
    q_next = jnp.where(lane < action_size, q_next, -jnp.inf)
    q_max = jnp.max(q_next, axis=-1, keepdims=True)              # (B, 1)
    tgt_ref[...] = r_ref[...] + gamma * (1.0 - t_ref[...]) * q_max


def _forward_padded(x, params):
    """Runs the fused forward kernel; returns the lane-dense (B, OUT_PAD) output."""
    slab, wbf = params["f32_slab"], params["wbf_slab"]
    B, S = x.shape
    H = slab.shape[1]
    out_pad = wbf.shape[1]

    flops = 2 * B * (S * H + H * H + H * out_pad)
    bytes_accessed = (x.size * x.dtype.itemsize
                      + slab.size * slab.dtype.itemsize
                      + wbf.size * wbf.dtype.itemsize
                      + B * out_pad * 4)

    vmem = pl.BlockSpec(memory_space=pltpu.VMEM)
    return pl.pallas_call(
        dqn_forward_kernel,
        out_shape=jax.ShapeDtypeStruct((B, out_pad), jnp.float32),
        in_specs=[vmem, vmem, vmem],
        out_specs=vmem,
        cost_estimate=pl.CostEstimate(flops=flops, transcendentals=0,
                                      bytes_accessed=bytes_accessed),
    )(x, slab, wbf)


def dqn_forward(x, params, action_size=ACTION_SIZE):
    """x: (B, space_size) f32 -> Q-values (B, action_size)."""
    return _forward_padded(x, params)[:, :action_size]


def dqn_replay_forward(states, next_states, rewards, terminations, params,
                       gamma=GAMMA, action_size=ACTION_SIZE):
    """One kernel launch for the replay step's forward math.

    Returns (Q(states)[:, :action_size], targets) where
    targets = rewards + gamma * (1 - terminations) * max_a Q(next_states).
    Both forwards use the same weights, exactly as the reference replay().
    """
    slab, wbf = params["f32_slab"], params["wbf_slab"]
    B, S = states.shape
    H = slab.shape[1]
    out_pad = wbf.shape[1]

    flops = 4 * B * (S * H + H * H + H * out_pad)
    bytes_accessed = (2 * states.size * 4 + rewards.size * 4
                      + terminations.size * 4
                      + slab.size * slab.dtype.itemsize
                      + wbf.size * wbf.dtype.itemsize
                      + B * out_pad * 4 + B * 4)

    vmem = pl.BlockSpec(memory_space=pltpu.VMEM)
    kernel = functools.partial(dqn_replay_kernel, gamma=float(gamma),
                               action_size=int(action_size))
    q_pad, targets = pl.pallas_call(
        kernel,
        out_shape=(jax.ShapeDtypeStruct((B, out_pad), jnp.float32),
                   jax.ShapeDtypeStruct((B, 1), jnp.float32)),
        in_specs=[vmem] * 6,
        out_specs=(vmem, vmem),
        cost_estimate=pl.CostEstimate(flops=flops, transcendentals=0,
                                      bytes_accessed=bytes_accessed),
    )(states, next_states, rewards, terminations, slab, wbf)
    return q_pad[:, :action_size], targets


def init_dqn_params(key, space_size=SPACE_SIZE, n_hidden=N_HIDDEN,
                    action_size=ACTION_SIZE, out_pad=OUT_PAD):
    """PyTorch-style init (U[-1/sqrt(fan_in), 1/sqrt(fan_in)]), packed for the kernel.

    Packing (reduces per-call DMAs from 7 to 3):
      f32_slab (8, n_hidden) f32 : rows [0:S)=w1, S=b1, S+1=b2, S+2=b3 (b3/w3
                                   zero-padded to out_pad columns), rest zero.
      wbf_slab (2*n_hidden, out_pad) bf16 : rows [0:H)=w2, [H:2H)=w3 (padded).
    """
    assert n_hidden == out_pad, "packed bf16 slab assumes n_hidden == out_pad"
    assert n_hidden % 128 == 0 and space_size + 3 <= 8
    keys = jax.random.split(key, 6)

    def uniform(k, shape, fan_in):
        bound = 1.0 / (float(fan_in) ** 0.5)
        return jax.random.uniform(k, shape, jnp.float32, -bound, bound)

    w1 = uniform(keys[0], (space_size, n_hidden), space_size)
    b1 = uniform(keys[1], (1, n_hidden), space_size)
    w2 = uniform(keys[2], (n_hidden, n_hidden), n_hidden)
    b2 = uniform(keys[3], (1, n_hidden), n_hidden)
    w3 = uniform(keys[4], (n_hidden, action_size), n_hidden)
    b3 = uniform(keys[5], (1, action_size), n_hidden)

    w3p = jnp.pad(w3, ((0, 0), (0, out_pad - action_size)))
    b3p = jnp.pad(b3, ((0, 0), (0, out_pad - action_size)))

    rows = space_size + 3
    pieces = [w1, b1, b2, b3p]
    if rows < 8:
        pieces.append(jnp.zeros((8 - rows, n_hidden), jnp.float32))
    f32_slab = jnp.concatenate(pieces, axis=0)                  # (8, H) f32
    wbf_slab = jnp.concatenate([w2, w3p], axis=0).astype(jnp.bfloat16)

    return {"f32_slab": f32_slab, "wbf_slab": wbf_slab}


def _unpack_params(params, space_size):
    slab = params["f32_slab"]
    wbf = params["wbf_slab"]
    H = slab.shape[1]
    S = space_size
    return (slab[0:S, :], slab[S:S + 1, :], wbf[0:H, :],
            slab[S + 1:S + 2, :], wbf[H:2 * H, :], slab[S + 2:S + 3, :])


def dqn_forward_ref(x, params, action_size=ACTION_SIZE):
    """Pure-JAX reference mirroring the kernel's numerics (bf16 MXU operands, f32 acc)."""
    w1, b1, w2, b2, w3, b3 = _unpack_params(params, x.shape[1])
    h1 = jnp.maximum(x @ w1 + b1, 0.0)
    h2 = jnp.dot(h1.astype(jnp.bfloat16), w2, preferred_element_type=jnp.float32)
    h2 = jnp.maximum(h2 + b2, 0.0)
    out = jnp.dot(h2.astype(jnp.bfloat16), w3,
                  preferred_element_type=jnp.float32) + b3
    return out[:, :action_size]


# TODO(synk): replay-buffer sampling, epsilon-greedy act(), the MSE loss backward
# pass and the Adam update are RL-training machinery, not part of the module's
# forward pass, and are not translated to Pallas here.

if __name__ == "__main__":
    key = jax.random.PRNGKey(0)
    pkey, skey, nkey, rkey, tkey = jax.random.split(key, 5)

    batch = 32  # matches DQN.batch_size
    params = init_dqn_params(pkey)
    states = jax.random.normal(skey, (batch, SPACE_SIZE), jnp.float32)
    next_states = jax.random.normal(nkey, (batch, SPACE_SIZE), jnp.float32)
    rewards = jax.random.uniform(rkey, (batch, 1), jnp.float32)
    terminations = (jax.random.uniform(tkey, (batch, 1)) < 0.1).astype(jnp.float32)

    # Single forward pass (the nn.Module forward).
    q = jax.block_until_ready(dqn_forward(states, params))
    q_ref = dqn_forward_ref(states, params)
    assert q.shape == (batch, ACTION_SIZE)
    assert jnp.allclose(q, q_ref, atol=1e-3, rtol=1e-3), "forward mismatch vs reference"

    # Fused replay-step forward math (one kernel launch, same weights per spec).
    q_cur, targets = dqn_replay_forward(states, next_states, rewards,
                                        terminations, params)
    jax.block_until_ready(targets)
    q_next_ref = dqn_forward_ref(next_states, params)
    tgt_ref = rewards + GAMMA * (1.0 - terminations) * jnp.max(
        q_next_ref, axis=-1, keepdims=True)
    assert jnp.allclose(q_cur, q_ref, atol=1e-3, rtol=1e-3), "replay Q mismatch"
    assert jnp.allclose(targets, tgt_ref, atol=1e-3, rtol=1e-3), "target mismatch"

    print("KERNEL_OK")
</pallas_src>

<mosaic_0001>
module attributes {stable_mosaic.version = 11 : i64} {
  func.func @dqn_forward_kernel(%arg0: memref<32x4xf32, #tpu.memory_space<vmem>>, %arg1: memref<8x128xf32, #tpu.memory_space<vmem>>, %arg2: memref<256x128xbf16, #tpu.memory_space<vmem>>, %arg3: memref<32x128xf32, #tpu.memory_space<vmem>>) attributes {dimension_semantics = [], scalar_prefetch = 0 : i64, scratch_operands = 0 : i64, tpu.core_type = #tpu.core_type<tc>} {
    %c0 = arith.constant 0 : index
    %c0_0 = arith.constant 0 : index
    %0 = vector.load %arg1[%c0, %c0_0] : memref<8x128xf32, #tpu.memory_space<vmem>>, vector<8x128xf32>
    %c0_1 = arith.constant 0 : index
    %c0_2 = arith.constant 0 : index
    %1 = vector.load %arg2[%c0_1, %c0_2] : memref<256x128xbf16, #tpu.memory_space<vmem>>, vector<128x128xbf16>
    %c128 = arith.constant 128 : index
    %c0_3 = arith.constant 0 : index
    %2 = vector.load %arg2[%c128, %c0_3] : memref<256x128xbf16, #tpu.memory_space<vmem>>, vector<128x128xbf16>
    %c0_4 = arith.constant 0 : index
    %c0_5 = arith.constant 0 : index
    %3 = vector.load %arg0[%c0_4, %c0_5] : memref<32x4xf32, #tpu.memory_space<vmem>>, vector<32x4xf32>
    %4 = vector.extract_strided_slice %3 {offsets = [0, 0], sizes = [32, 1], strides = [1, 1]} : vector<32x4xf32> to vector<32x1xf32>
    %5 = vector.extract_strided_slice %0 {offsets = [0, 0], sizes = [1, 128], strides = [1, 1]} : vector<8x128xf32> to vector<1x128xf32>
    %6 = vector.broadcast %4 : vector<32x1xf32> to vector<32x128xf32>
    %7 = vector.broadcast %5 : vector<1x128xf32> to vector<32x128xf32>
    %8 = arith.mulf %6, %7 : vector<32x128xf32>
    %9 = vector.extract_strided_slice %3 {offsets = [0, 1], sizes = [32, 1], strides = [1, 1]} : vector<32x4xf32> to vector<32x1xf32>
    %10 = vector.extract_strided_slice %0 {offsets = [1, 0], sizes = [1, 128], strides = [1, 1]} : vector<8x128xf32> to vector<1x128xf32>
    %11 = vector.broadcast %9 : vector<32x1xf32> to vector<32x128xf32>
    %12 = vector.broadcast %10 : vector<1x128xf32> to vector<32x128xf32>
    %13 = arith.mulf %11, %12 : vector<32x128xf32>
    %14 = arith.addf %8, %13 : vector<32x128xf32>
    %15 = vector.extract_strided_slice %3 {offsets = [0, 2], sizes = [32, 1], strides = [1, 1]} : vector<32x4xf32> to vector<32x1xf32>
    %16 = vector.extract_strided_slice %0 {offsets = [2, 0], sizes = [1, 128], strides = [1, 1]} : vector<8x128xf32> to vector<1x128xf32>
    %17 = vector.broadcast %15 : vector<32x1xf32> to vector<32x128xf32>
    %18 = vector.broadcast %16 : vector<1x128xf32> to vector<32x128xf32>
    %19 = arith.mulf %17, %18 : vector<32x128xf32>
    %20 = arith.addf %14, %19 : vector<32x128xf32>
    %21 = vector.extract_strided_slice %3 {offsets = [0, 3], sizes = [32, 1], strides = [1, 1]} : vector<32x4xf32> to vector<32x1xf32>
    %22 = vector.extract_strided_slice %0 {offsets = [3, 0], sizes = [1, 128], strides = [1, 1]} : vector<8x128xf32> to vector<1x128xf32>
    %23 = vector.broadcast %21 : vector<32x1xf32> to vector<32x128xf32>
    %24 = vector.broadcast %22 : vector<1x128xf32> to vector<32x128xf32>
    %25 = arith.mulf %23, %24 : vector<32x128xf32>
    %26 = arith.addf %20, %25 : vector<32x128xf32>
    %27 = vector.extract_strided_slice %0 {offsets = [4, 0], sizes = [1, 128], strides = [1, 1]} : vector<8x128xf32> to vector<1x128xf32>
    %28 = vector.broadcast %27 : vector<1x128xf32> to vector<32x128xf32>
    %29 = arith.addf %26, %28 : vector<32x128xf32>
    %cst = arith.constant 0.000000e+00 : f32
    %30 = vector.broadcast %cst : f32 to vector<32x128xf32>
    %31 = arith.maximumf %29, %30 : vector<32x128xf32>
    %32 = arith.truncf %31 : vector<32x128xf32> to vector<32x128xbf16>
    %cst_6 = arith.constant dense<0.000000e+00> : vector<32x128xf32>
    %33 = tpu.matmul %32, %1, %cst_6 {dimension_numbers = #tpu.dot_dimension_numbers<[1], [0], [0], [1], [0, 0, 1, 1], [], []>} : vector<32x128xbf16>, vector<128x128xbf16>, vector<32x128xf32> -> vector<32x128xf32>
    %34 = vector.extract_strided_slice %0 {offsets = [5, 0], sizes = [1, 128], strides = [1, 1]} : vector<8x128xf32> to vector<1x128xf32>
    %35 = vector.broadcast %34 : vector<1x128xf32> to vector<32x128xf32>
    %36 = arith.addf %33, %35 : vector<32x128xf32>
    %cst_7 = arith.constant 0.000000e+00 : f32
    %37 = vector.broadcast %cst_7 : f32 to vector<32x128xf32>
    %38 = arith.maximumf %36, %37 : vector<32x128xf32>
    %39 = arith.truncf %38 : vector<32x128xf32> to vector<32x128xbf16>
    %cst_8 = arith.constant dense<0.000000e+00> : vector<32x128xf32>
    %40 = tpu.matmul %39, %2, %cst_8 {dimension_numbers = #tpu.dot_dimension_numbers<[1], [0], [0], [1], [0, 0, 1, 1], [], []>} : vector<32x128xbf16>, vector<128x128xbf16>, vector<32x128xf32> -> vector<32x128xf32>
    %41 = vector.extract_strided_slice %0 {offsets = [6, 0], sizes = [1, 128], strides = [1, 1]} : vector<8x128xf32> to vector<1x128xf32>
    %42 = vector.broadcast %41 : vector<1x128xf32> to vector<32x128xf32>
    %43 = arith.addf %40, %42 : vector<32x128xf32>
    %c0_9 = arith.constant 0 : index
    %c0_10 = arith.constant 0 : index
    %44 = vector.load %arg3[%c0_9, %c0_10] : memref<32x128xf32, #tpu.memory_space<vmem>>, vector<32x128xf32>
    tpu.vector_store %arg3[%c0_9, %c0_10], %43 {strides = array<i32>} : memref<32x128xf32, #tpu.memory_space<vmem>>, vector<32x128xf32>,
    return
  }
}

</mosaic_0001>

<bundles_post_ra>
// kernel: tpu_custom_call.1
= control target key start
LH: loop header
LB: loop body
LE: loop exit
PB: predicated region body
PF: predicated region fallthrough
CT: control target
= control target key end

     0   :  { %8 = vsyncpa [#allocation3], 0  ;;  %s668_s0 = inlined_call_operand.vmem [shape: f32[32,4], index: 0, kind: input, shape index: {}]   ;;  %s669_s1 = inlined_call_operand.vmem [shape: f32[8,128], index: 1, kind: input, shape index: {}]   ;;  %s670_s2 = inlined_call_operand.hbm [shape: bf16[256,128], index: 2, kind: input, shape index: {}]   ;;  %s671_s3 = inlined_call_operand.hbm [shape: f32[32,128], index: 3, kind: output, shape index: {}]  }
   0x1   :  { %9 = vsyncpa [#allocation4], 0  ;;  %s581_s12 = smov [#allocation2]   ;;  %s533_s16 = scalar_lea.hbm %s670_s2, 2048 }
   0x2   :  { %s19_s13 = sshll.u32 %s581_s12, 4  ;;  %p534_p0 = scmp.ne.s32.totalorder %s670_s2, %s533_s16  ;;  %s20_s13 = int_to_ptr.vmem [resolvable:$true] %s19_s13 }
   0x3   :  { %p537_p1 = scmp.lt.u32.totalorder %s533_s16, %s670_s2 }
   0x5   :  { %p539_p2 = pnand %p537_p1, %p534_p0 }
   0x7   :  { %542 = shalt.err (!%p539_p2)
}
   0x8   :  { %s543_s21 = scalar_lea.vmem %s20_s13, 2048  ;;  %p548_p4 = scmp.lt.s32.totalorder %s20_s13, %s20_s13 }
   0x9   :  { %p544_p3 = scmp.ne.s32.totalorder %s20_s13, %s543_s21  ;;  %p549_p5 = scmp.lt.s32.totalorder %s543_s21, %s543_s21 }
   0xb   :  { %p550_p6 = por %p549_p5, %p548_p4 }
   0xd   :  { %p551_p7 = pnand %p550_p6, %p544_p3 }
   0xf   :  { %554 = shalt.err (!%p551_p7)
}
  0x10   :  { %s582_s22 = smov 64   ;;  %s583_s23 = smov 4  }
  0x11   :  { %25 = dma.hbm_to_vmem [thread:$0]  %s670_s2, 2048, %s20_s13, [#allocation3], %s582_s22, %s582_s22, %s583_s23  }
  0x12   :  { %577 = dma.done.wait [#allocation3], 2048  }
  0x13   :  { %578 = vsyncadd [#allocation3], 4294965248  ;;  %v584_v0 = vmov 1   ;;  %v585_v1 = vmov 0   ;;  %v63_v2 = vld [vmem:[%s668_s0] sm:$0xff]  ;;  %v64_v3 = vld [vmem:[%s668_s0 + $0x8] sm:$0xff]  ;;  %v87_v26 = vlaneseq }
  0x14   :  { %509 = vset.pattern.permute.xlu1 %v584_v0  ;;  %508 = vset.pattern.permute.xlu0 %v585_v1  ;;  %v65_v4 = vld [vmem:[%s668_s0 + $0x10] sm:$0xff]  ;;  %v66_v5 = vld [vmem:[%s668_s0 + $0x18] sm:$0xff]  ;;  %v517_v6 = vld [vmem:[#allocation2] sm:$0xff]   ;;  %v586_v8 = vmov 2   ;;  %v587_v10 = vmov 3  }
  0x15   :  { %96 = vperm.xlu1 %509, %v63_v2   ;;  %69 = vperm.xlu0 %508, %v63_v2   ;;  %v518_v7 = vld [vmem:[#allocation2 + $0x8] sm:$0xff]   ;;  %v519_v9 = vld [vmem:[#allocation2 + $0x10] sm:$0xff]   ;;  %v520_v11 = vld [vmem:[#allocation2 + $0x18] sm:$0xff]   ;;  %v635_v29 = vshrl.u32 %v87_v26, 7 }
  0x16   :  { %458 = vmatprep.subr.bf16.mxu0 %v517_v6  ;;  %v521_v12 = vld [vmem:[#allocation2 + $0x20] sm:$0xff]   ;;  %v522_v13 = vld [vmem:[#allocation2 + $0x28] sm:$0xff]   ;;  %v523_v14 = vld [vmem:[#allocation2 + $0x30] sm:$0xff]  }
  0x17   :  { %459 = vmatpush3.bf16.msra.mxu0 %v517_v6  ;;  %v524_v15 = vld [vmem:[#allocation2 + $0x38] sm:$0xff]   ;;  %v525_v16 = vld [vmem:[#allocation2 + $0x40] sm:$0xff]   ;;  %v526_v17 = vld [vmem:[#allocation2 + $0x48] sm:$0xff]   ;;  %v113_v32 = vsub.s32 1, %v635_v29  ;;  %v89_v33 = vsub.s32 0, %v635_v29  ;;  %v141_v35 = vsub.s32 2, %v635_v29 }
  0x18   :  { %460 = vmatprep.subr.bf16.mxu0 %v518_v7  ;;  %478 = vmatprep.subr.bf16.mxu1 %v525_v16  ;;  %v527_v18 = vld [vmem:[#allocation2 + $0x50] sm:$0xff]   ;;  %v528_v19 = vld [vmem:[#allocation2 + $0x58] sm:$0xff]   ;;  %v529_v20 = vld [vmem:[#allocation2 + $0x60] sm:$0xff]   ;;  %v169_v40 = vsub.s32 3, %v635_v29  ;;  %v181_v51 = vsub.s32 4, %v635_v29 }
  0x19   :  { %100 = vperm.xlu1 %509, %v64_v3   ;;  %74 = vperm.xlu0 %508, %v64_v3   ;;  %v530_v21 = vld [vmem:[#allocation2 + $0x68] sm:$0xff]   ;;  %v642_v34 = vld [vmem:[%s669_s1] sm:$0xff]  ;;  %s588_s1 = smov [#allocation5]  }
  0x1a   :  { %479 = vmatpush3.bf16.msra.mxu1 %v525_v16  ;;  %v114_v37 = vrot.slane %v642_v34, %v113_v32  ;;  %v90_v38 = vrot.slane %v642_v34, %v89_v33  ;;  %v142_v41 = vrot.slane %v642_v34, %v141_v35  ;;  %v170_v45 = vrot.slane %v642_v34, %v169_v40  ;;  %v532_v26 = vld [vmem:[#allocation2 + $0x78] sm:$0xff]   ;;  %s410_s7 = sshll.u32 %s588_s1, 4  ;;  %s411_s7 = int_to_ptr.vmem [resolvable:$true] %s410_s7 }
  0x1b   :  { %461 = vmatpush3.bf16.msra.mxu0 %v518_v7  ;;  %480 = vmatprep.subr.bf16.mxu1 %v526_v17  ;;  %v182_v62 = vrot.slane %v642_v34, %v181_v51  ;;  %s555_s8 = scalar_lea.vmem %s411_s7, 512  ;;  %p560_p9 = scmp.lt.s32.totalorder %s411_s7, %s411_s7 }
  0x1c   :  { %462 = vmatprep.subr.bf16.mxu0 %v519_v9  ;;  %p556_p8 = scmp.ne.s32.totalorder %s411_s7, %s555_s8  ;;  %p561_p10 = scmp.lt.s32.totalorder %s555_s8, %s555_s8 }
  0x1d   :  { %510 = vset.pattern.permute.xlu1 %v585_v1  ;;  %79 = vperm.xlu0 %508, %v65_v4  }
  0x1e   :  { %84 = vperm.xlu1 %510, %v66_v5   ;;  %481 = vmatpush3.bf16.msra.mxu1 %v526_v17  ;;  %p562_p11 = por %p561_p10, %p560_p9 }
  0x1f   :  { %463 = vmatpush3.bf16.msra.mxu0 %v519_v9  ;;  %482 = vmatprep.subr.bf16.mxu1 %v527_v18 }
  0x20   :  { %464 = vmatprep.subr.bf16.mxu0 %v520_v11  ;;  %p563_p12 = pnand %p562_p11, %p556_p8 }
  0x21   :  { %511 = vset.pattern.permute.xlu0 %v584_v0 }
  0x22   :  { %512 = vset.pattern.permute.xlu1 %v584_v0  ;;  %104 = vperm.xlu0 %511, %v65_v4  }
  0x23   :  { %108 = vperm.xlu1 %512, %v66_v5   ;;  %465 = vmatpush3.bf16.msra.mxu0 %v520_v11 }
  0x24   :  { %466 = vmatprep.subr.bf16.mxu0 %v521_v12  ;;  %483 = vmatpush3.bf16.msra.mxu1 %v527_v18 }
  0x25   :  { %484 = vmatprep.subr.bf16.mxu1 %v528_v19 }
  0x26   :  { %514 = vset.pattern.permute.xlu0 %v586_v8 }
  0x27   :  { %513 = vset.pattern.permute.xlu1 %v586_v8  ;;  %128 = vperm.xlu0 %514, %v64_v3  }
  0x28   :  { %124 = vperm.xlu1 %513, %v63_v2   ;;  %467 = vmatpush3.bf16.msra.mxu0 %v521_v12 }
  0x29   :  { %468 = vmatprep.subr.bf16.mxu0 %v522_v13  ;;  %485 = vmatpush3.bf16.msra.mxu1 %v528_v19 }
  0x2a   :  { %486 = vmatprep.subr.bf16.mxu1 %v529_v20 }
  0x2b   :  { %515 = vset.pattern.permute.xlu0 %v587_v10 }
  0x2c   :  { %132 = vperm.xlu1 %513, %v65_v4   ;;  %152 = vperm.xlu0 %515, %v63_v2  }
  0x2d   :  { %469 = vmatpush3.bf16.msra.mxu0 %v522_v13  ;;  %487 = vmatpush3.bf16.msra.mxu1 %v529_v20 }
  0x2e   :  { %470 = vmatprep.subr.bf16.mxu0 %v523_v14  ;;  %488 = vmatprep.subr.bf16.mxu1 %v530_v21 }
  0x30   :  { %136 = vperm.xlu1 %513, %v66_v5   ;;  %164 = vperm.xlu0 %515, %v66_v5  }
  0x31   :  { %471 = vmatpush3.bf16.msra.mxu0 %v523_v14  ;;  %489 = vmatpush3.bf16.msra.mxu1 %v530_v21 }
  0x32   :  { %472 = vmatprep.subr.bf16.mxu0 %v524_v15 }
  0x34   :  { %516 = vset.pattern.permute.xlu1 %v587_v10 }
  0x35   :  { %156 = vperm.xlu1 %516, %v64_v3   ;;  %473 = vmatpush3.bf16.msra.mxu0 %v524_v15 }
  0x39   :  { %160 = vperm.xlu1 %516, %v65_v4  }
  0x94   :  { %v97_v22 = vpop.permute.xlu1 %96  ;;  %v70_v23 = vpop.permute.xlu0 %69 }
  0x95   :  { %v115_v42 = vmul.f32 %v114_v37, %v97_v22  ;;  %v91_v43 = vmul.f32 %v90_v38, %v70_v23 }
  0x97   :  { %v119_v52 = vadd.f32 %v115_v42, %v91_v43 }
  0x98   :  { %v101_v24 = vpop.permute.xlu1 %100  ;;  %v75_v25 = vpop.permute.xlu0 %74 }
  0x99   :  { %v116_v49 = vmul.f32 %v114_v37, %v101_v24  ;;  %v92_v50 = vmul.f32 %v90_v38, %v75_v25  ;;  %v531_v25 = vld [vmem:[#allocation2 + $0x70] sm:$0xff]  }
  0x9a   :  { %490 = vmatprep.subr.bf16.mxu1 %v531_v25 }
  0x9b   :  { %v120_v61 = vadd.f32 %v116_v49, %v92_v50  ;;  %491 = vmatpush3.bf16.msra.mxu1 %v531_v25 }
  0x9c   :  { %v80_v27 = vpop.permute.xlu0 %79  ;;  %492 = vmatprep.subr.bf16.mxu1 %v532_v26 }
  0x9d   :  { %v85_v28 = vpop.permute.xlu1 %84  ;;  %v93_v4 = vmul.f32 %v90_v38, %v80_v27  ;;  %v195_v27 = vsub.s32 5, %v635_v29 }
  0x9e   :  { %v94_v53 = vmul.f32 %v90_v38, %v85_v28 }
  0x9f   :  { %493 = vmatpush3.bf16.msra.mxu1 %v532_v26  ;;  %v196_v28 = vrot.slane %v642_v34, %v195_v27 }
  0xa1   :  { %v105_v30 = vpop.permute.xlu0 %104 }
  0xa2   :  { %v109_v31 = vpop.permute.xlu1 %108  ;;  %v117_v63 = vmul.f32 %v114_v37, %v105_v30 }
  0xa3   :  { %v118_v47 = vmul.f32 %v114_v37, %v109_v31 }
  0xa4   :  { %v121_v8 = vadd.f32 %v117_v63, %v93_v4 }
  0xa5   :  { %v122_v58 = vadd.f32 %v118_v47, %v94_v53 }
  0xa6   :  { %v129_v36 = vpop.permute.xlu0 %128 }
  0xa7   :  { %v125_v39 = vpop.permute.xlu1 %124  ;;  %v144_v59 = vmul.f32 %v142_v41, %v129_v36 }
  0xa8   :  { %v143_v48 = vmul.f32 %v142_v41, %v125_v39 }
  0xa9   :  { %v148_v5 = vadd.f32 %v144_v59, %v120_v61 }
  0xaa   :  { %v147_v60 = vadd.f32 %v143_v48, %v119_v52 }
  0xab   :  { %v133_v44 = vpop.permute.xlu1 %132  ;;  %v153_v46 = vpop.permute.xlu0 %152 }
  0xac   :  { %v171_v54 = vmul.f32 %v170_v45, %v153_v46  ;;  %v145_v6 = vmul.f32 %v142_v41, %v133_v44 }
  0xae   :  { %v175_v0 = vadd.f32 %v171_v54, %v147_v60  ;;  %v149_v13 = vadd.f32 %v145_v6, %v121_v8 }
  0xaf   :  { %v137_v55 = vpop.permute.xlu1 %136  ;;  %v165_v57 = vpop.permute.xlu0 %164 }
  0xb0   :  { %v146_v56 = vmul.f32 %v142_v41, %v137_v55  ;;  %v174_v2 = vmul.f32 %v170_v45, %v165_v57  ;;  %v183_v11 = vadd.f32 %v182_v62, %v175_v0 }
  0xb2   :  { %v150_v1 = vadd.f32 %v146_v56, %v122_v58  ;;  %v187_v18 = vmax.f32 %v183_v11, 0.0 }
  0xb4   :  { %v157_v3 = vpop.permute.xlu1 %156  ;;  %v178_v9 = vadd.f32 %v174_v2, %v150_v1 }
  0xb5   :  { %v172_v7 = vmul.f32 %v170_v45, %v157_v3 }
  0xb6   :  { %v186_v16 = vadd.f32 %v182_v62, %v178_v9 }
  0xb7   :  { %v176_v10 = vadd.f32 %v172_v7, %v148_v5 }
  0xb8   :  { %v161_v12 = vpop.permute.xlu1 %160  ;;  %v190_v22 = vmax.f32 %v186_v16, 0.0 }
  0xb9   :  { %v173_v14 = vmul.f32 %v170_v45, %v161_v12  ;;  %v184_v15 = vadd.f32 %v182_v62, %v176_v10  ;;  %v302_v45 = vsub.s32 6, %v635_v29 }
  0xbb   :  { %v177_v17 = vadd.f32 %v173_v14, %v149_v13  ;;  %v188_v19 = vmax.f32 %v184_v15, 0.0  ;;  %v303_v46 = vrot.slane %v642_v34, %v302_v45 }
  0xbd   :  { %v185_v20 = vadd.f32 %v182_v62, %v177_v17  ;;  %v191_v21 = vpack.c.bf16 %v188_v19, %v187_v18 }
  0xbf   :  { %v189_v23 = vmax.f32 %v185_v20, 0.0  ;;  %474 = vmatprep.mubr.bf16.mxu0 %v191_v21 }
  0xc1   :  { %v192_v24 = vpack.c.bf16 %v190_v22, %v189_v23 }
  0xc3   :  { %475 = vmatmul.mubr.bf16.vlgmr.msra.gmra.mrb[0].mxu0 %v192_v24 }
 0x196   :  { %v476_v30 = vpop.f32.mrb[0].mxu0 }
 0x197   :  { %v288_v31 = vadd.f32 %v476_v30, %v196_v28  ;;  %v279_v32 = vpop.f32.mrb[1].mxu0 }
 0x198   :  { %v280_v33 = vadd.f32 %v279_v32, %v196_v28  ;;  %v477_v35 = vpop.f32.mrb[2].mxu0 }
 0x199   :  { %v291_v36 = vadd.f32 %v477_v35, %v196_v28  ;;  %v282_v37 = vpop.f32.mrb[3].mxu0  ;;  %v296_v39 = vmax.f32 %v288_v31, 0.0 }
 0x19a   :  { %v283_v38 = vadd.f32 %v282_v37, %v196_v28  ;;  %v294_v41 = vmax.f32 %v280_v33, 0.0 }
 0x19b   :  { %v297_v40 = vmax.f32 %v291_v36, 0.0 }
 0x19c   :  { %v295_v42 = vmax.f32 %v283_v38, 0.0 }
 0x19d   :  { %v299_v43 = vpack.c.bf16 %v297_v40, %v296_v39 }
 0x19e   :  { %v298_v44 = vpack.c.bf16 %v295_v42, %v294_v41 }
 0x1a0   :  { %494 = vmatprep.mubr.bf16.mxu1 %v298_v44 }
 0x1a1   :  { %495 = vmatmul.mubr.bf16.vlgmr.msra.gmra.mrb[0].mxu1 %v299_v43 }
 0x274   :  { %v496_v47 = vpop.f32.mrb[0].mxu1 }
 0x275   :  { %v395_v48 = vadd.f32 %v496_v47, %v303_v46  ;;  %v386_v49 = vpop.f32.mrb[1].mxu1 }
 0x276   :  { %v387_v50 = vadd.f32 %v386_v49, %v303_v46  ;;  %v497_v51 = vpop.f32.mrb[2].mxu1 }
 0x277   :  { %403 = vst [vmem:[#allocation5 + $0x10] sm:$0xff] %v395_v48  ;;  %v398_v52 = vadd.f32 %v497_v51, %v303_v46  ;;  %v389_v53 = vpop.f32.mrb[3].mxu1 }
 0x278   :  { %401 = vst [vmem:[#allocation5] sm:$0xff] %v387_v50  ;;  %v390_v54 = vadd.f32 %v389_v53, %v303_v46 }
 0x279   :  { %404 = vst [vmem:[#allocation5 + $0x18] sm:$0xff] %v398_v52 }
 0x27a   :  { %402 = vst [vmem:[#allocation5 + $0x8] sm:$0xff] %v390_v54 }
 0x27b   :  { %566 = shalt.err (!%p563_p12)
}
 0x27c   :  { %s567_s11 = scalar_lea.hbm %s671_s3, 512 }
 0x27d   :  { %p568_p13 = scmp.ne.s32.totalorder %s671_s3, %s567_s11  ;;  %p571_p0 = scmp.lt.u32.totalorder %s567_s11, %s671_s3 }
 0x27f   :  { %p573_p1 = pnand %p571_p0, %p568_p13 }
 0x281   :  { %576 = shalt.err (!%p573_p1)
}
 0x282   :  { %s589_s16 = smov 128   ;;  %s590_s17 = smov 8  }
 0x283   :  { %416 = dma.vmem_to_hbm [thread:$0]  %s411_s7, 512, %s671_s3, [#allocation4], %s589_s16, %s589_s16, %s590_s17  }
 0x284   :  { %579 = dma.done.wait [#allocation4], 512  }
 0x285   :  { %580 = vsyncadd [#allocation4], 4294966784 }
 0x286   :  { %420 = vsyncpa [#allocation3], 1 }
 0x287   :  { %421 = vsyncpa [#allocation4], 1 }

</bundles_post_ra>
